<compile_context>
chip_gen: v7x
topology: tpu7x:2x2x1
jax: 0.10.0
libtpu: 0.0.40
codegen_flags: <defaults>
</compile_context>

<pallas_src>
import math
import functools

import jax
import jax.numpy as jnp
from jax import lax
from jax.experimental import pallas as pl
from jax.experimental.pallas import tpu as pltpu

DROPOUT_P = 0.1
# In the PyTorch module: inv_scale_factor = 1/sqrt(len(self._query.flatten().shape))
# = 1/sqrt(1) = 1.0, and scaled_qk = qk.div(inv_scale_factor) -> identity scaling.
INV_SCALE_FACTOR = 1.0 / math.sqrt(1)


def _attn_kernel(x_ref, u_ref, o_ref, *, dropout_p, inv_scale_factor):
    # x_ref block: (Bt, S, D) f32 in VMEM; u_ref block: (Bt, S, S) uniform [0,1).
    x = x_ref[...]

    # qk[b] = x[b] @ x[b]^T — transpose folded into the contraction (no XLU
    # transpose / extra VMEM temporary), f32 accumulation on the MXU.
    qk = lax.dot_general(
        x, x,
        dimension_numbers=(((2,), (2,)), ((0,), (0,))),
        preferred_element_type=jnp.float32)                 # (Bt, S, S)

    # inv_scale_factor == 1.0 for this module — delete the no-op at trace time.
    if inv_scale_factor != 1.0:
        qk = qk / inv_scale_factor

    # numerically-stable softmax over the last dim, with the dropout keep-scale
    # 1/(1-p) folded into the normalization (one reciprocal, no extra (S,S) mul).
    m = jnp.max(qk, axis=-1, keepdims=True)
    e = jnp.exp(qk - m)
    denom = jnp.sum(e, axis=-1, keepdims=True)
    inv = 1.0 / (denom * (1.0 - dropout_p))

    keep = u_ref[...] >= dropout_p                           # drop w.p. p
    dropped = jnp.where(keep, e * inv, 0.0)                  # (Bt, S, S)

    # output[b] = dropped[b] @ x[b]
    out = lax.dot_general(
        dropped, x,
        dimension_numbers=(((2,), (1,)), ((0,), (0,))),
        preferred_element_type=jnp.float32)                  # (Bt, S, D)
    o_ref[...] = out.astype(o_ref.dtype)


def softmax_dot_attention(x, dropout_key, dropout_p=DROPOUT_P):
    """Pallas implementation of Model.forward: dropout(softmax(x @ x^T)) @ x."""
    B, S, D = x.shape
    # Dropout randomness drawn outside the kernel (see header comment).
    u = jax.random.uniform(dropout_key, (B, S, S), dtype=jnp.float32)

    # At these shapes the kernel is step-overhead bound: put all batch rows in a
    # single grid step.  (Bt can be lowered if B*S*S ever threatens VMEM.)
    bt = B
    grid = (pl.cdiv(B, bt),)

    kernel = functools.partial(
        _attn_kernel, dropout_p=dropout_p, inv_scale_factor=INV_SCALE_FACTOR)

    return pl.pallas_call(
        kernel,
        out_shape=jax.ShapeDtypeStruct((B, S, D), x.dtype),
        grid=grid,
        in_specs=[
            pl.BlockSpec((bt, S, D), lambda b: (b, 0, 0)),
            pl.BlockSpec((bt, S, S), lambda b: (b, 0, 0)),
        ],
        out_specs=pl.BlockSpec((bt, S, D), lambda b: (b, 0, 0)),
        # Batch-block axis is fully independent -> parallel (shards across the
        # two TensorCores on v7x; neutral on v5e/v6e).
        compiler_params=pltpu.CompilerParams(
            dimension_semantics=("parallel",)),
    )(x, u)


def _reference(x, u, dropout_p):
    """Pure-JAX reference with the same dropout mask (for correctness check)."""
    qk = jnp.einsum("bqd,bkd->bqk", x, x)
    p = jax.nn.softmax(qk, axis=-1)
    keep = u >= dropout_p
    dropped = jnp.where(keep, p / (1.0 - dropout_p), 0.0)
    return jnp.einsum("bqk,bkd->bqd", dropped, x)


if __name__ == "__main__":
    # Small shapes consistent with the module's (batch, seq, dim) self-attention
    # on x.  The module's __init__ tensors (torch.randn(1, 32, 64, 64)) only
    # affect the forward via len(query.flatten().shape) == 1, i.e. the identity
    # scale constant — there are no learned parameters.
    B, S, D = 2, 64, 32
    key = jax.random.PRNGKey(0)
    x_key, drop_key = jax.random.split(key)
    x = jax.random.normal(x_key, (B, S, D), dtype=jnp.float32)

    # Correctness check with dropout disabled (deterministic path).
    out_nodrop = jax.block_until_ready(
        softmax_dot_attention(x, drop_key, dropout_p=0.0))
    ref_nodrop = _reference(x, jnp.ones((B, S, S), jnp.float32), 0.0)
    assert jnp.allclose(out_nodrop, ref_nodrop, atol=1e-4, rtol=1e-4)

    # Forward with the module's dropout_p = 0.1 (training semantics).
    out = jax.block_until_ready(softmax_dot_attention(x, drop_key, DROPOUT_P))
    assert out.shape == (B, S, D) and out.dtype == jnp.float32
    assert bool(jnp.all(jnp.isfinite(out)))
    print("KERNEL_OK")
</pallas_src>

<mosaic_0001>
module attributes {stable_mosaic.version = 11 : i64} {
  func.func @_attn_kernel(%arg0: i32, %arg1: memref<2x64x32xf32, #tpu.memory_space<vmem>>, %arg2: memref<2x64x64xf32, #tpu.memory_space<vmem>>, %arg3: memref<2x64x32xf32, #tpu.memory_space<vmem>>) attributes {dimension_semantics = [#tpu.dimension_semantics<parallel>], iteration_bounds = array<i64: 1>, scalar_prefetch = 0 : i64, scratch_operands = 0 : i64, tpu.core_type = #tpu.core_type<tc>, window_params = [{transform_indices = @transform_0, window_bounds = array<i64: 2, 64, 32>}, {transform_indices = @transform_1, window_bounds = array<i64: 2, 64, 64>}, {transform_indices = @transform_2, window_bounds = array<i64: 2, 64, 32>}]} {
    %c0 = arith.constant 0 : index
    %c0_0 = arith.constant 0 : index
    %c0_1 = arith.constant 0 : index
    %0 = vector.load %arg1[%c0, %c0_0, %c0_1] : memref<2x64x32xf32, #tpu.memory_space<vmem>>, vector<2x64x32xf32>
    %cst = arith.constant dense<0.000000e+00> : vector<2x64x64xf32>
    %1 = tpu.matmul %0, %0, %cst {dimension_numbers = #tpu.dot_dimension_numbers<[2], [2], [1], [1], [0, 0, 0, 1, 1, 1], [0], [0]>} : vector<2x64x32xf32>, vector<2x64x32xf32>, vector<2x64x64xf32> -> vector<2x64x64xf32>
    %cst_2 = arith.constant dense<0xFF800000> : vector<2x64xf32>
    %2 = vector.multi_reduction <maximumf>, %1, %cst_2 [2] : vector<2x64x64xf32> to vector<2x64xf32>
    %3 = vector.shape_cast %2 : vector<2x64xf32> to vector<2x64x1xf32>
    %4 = vector.broadcast %3 : vector<2x64x1xf32> to vector<2x64x64xf32>
    %5 = arith.subf %1, %4 : vector<2x64x64xf32>
    %6 = math.exp %5 : vector<2x64x64xf32>
    %cst_3 = arith.constant dense<0.000000e+00> : vector<2x64xf32>
    %7 = vector.multi_reduction <add>, %6, %cst_3 [2] : vector<2x64x64xf32> to vector<2x64xf32>
    %8 = vector.shape_cast %7 : vector<2x64xf32> to vector<2x64x1xf32>
    %cst_4 = arith.constant 1.000000e+00 : f32
    %9 = vector.broadcast %cst_4 : f32 to vector<2x64x1xf32>
    %10 = arith.mulf %8, %9 : vector<2x64x1xf32>
    %cst_5 = arith.constant 1.000000e+00 : f32
    %11 = vector.broadcast %cst_5 : f32 to vector<2x64x1xf32>
    %12 = arith.divf %11, %10 : vector<2x64x1xf32>
    %c0_6 = arith.constant 0 : index
    %c0_7 = arith.constant 0 : index
    %c0_8 = arith.constant 0 : index
    %13 = vector.load %arg2[%c0_6, %c0_7, %c0_8] : memref<2x64x64xf32, #tpu.memory_space<vmem>>, vector<2x64x64xf32>
    %cst_9 = arith.constant 0.000000e+00 : f32
    %14 = vector.broadcast %cst_9 : f32 to vector<2x64x64xf32>
    %15 = arith.cmpf oge, %13, %14 : vector<2x64x64xf32>
    %16 = vector.broadcast %12 : vector<2x64x1xf32> to vector<2x64x64xf32>
    %17 = arith.mulf %6, %16 : vector<2x64x64xf32>
    %cst_10 = arith.constant 0.000000e+00 : f32
    %18 = vector.broadcast %cst_10 : f32 to vector<2x64x64xf32>
    %19 = arith.select %15, %17, %18 : vector<2x64x64xi1>, vector<2x64x64xf32>
    %cst_11 = arith.constant dense<0.000000e+00> : vector<2x64x32xf32>
    %20 = tpu.matmul %19, %0, %cst_11 {dimension_numbers = #tpu.dot_dimension_numbers<[2], [1], [1], [2], [0, 0, 0, 1, 1, 2], [0], [0]>} : vector<2x64x64xf32>, vector<2x64x32xf32>, vector<2x64x32xf32> -> vector<2x64x32xf32>
    %c0_12 = arith.constant 0 : index
    %c0_13 = arith.constant 0 : index
    %c0_14 = arith.constant 0 : index
    %21 = vector.load %arg3[%c0_12, %c0_13, %c0_14] : memref<2x64x32xf32, #tpu.memory_space<vmem>>, vector<2x64x32xf32>
    tpu.vector_store %arg3[%c0_12, %c0_13, %c0_14], %20 {strides = array<i32>} : memref<2x64x32xf32, #tpu.memory_space<vmem>>, vector<2x64x32xf32>,
    return
  }
  func.func @transform_0(%arg0: i32) -> (i32, i32, i32) {
    %c0_i32 = arith.constant 0 : i32
    %c0_i32_0 = arith.constant 0 : i32
    %c0_i32_1 = arith.constant 0 : i32
    return %arg0, %c0_i32, %c0_i32_0 : i32, i32, i32
  }
  func.func @transform_1(%arg0: i32) -> (i32, i32, i32) {
    %c0_i32 = arith.constant 0 : i32
    %c0_i32_0 = arith.constant 0 : i32
    %c0_i32_1 = arith.constant 0 : i32
    return %arg0, %c0_i32, %c0_i32_0 : i32, i32, i32
  }
  func.func @transform_2(%arg0: i32) -> (i32, i32, i32) {
    %c0_i32 = arith.constant 0 : i32
    %c0_i32_0 = arith.constant 0 : i32
    %c0_i32_1 = arith.constant 0 : i32
    return %arg0, %c0_i32, %c0_i32_0 : i32, i32, i32
  }
}

</mosaic_0001>

<bundles_post_ra>
// kernel: tpu_custom_call.1
= control target key start
LH: loop header
LB: loop body
LE: loop exit
PB: predicated region body
PF: predicated region fallthrough
CT: control target
= control target key end

     0   :  { %vm27_vm0 = vcmask 261120   ;;  %vm286_vm2 = vcmask 523264   ;;  %s1554_s0 = inlined_call_operand.vmem [shape: f32[2,64,32], index: 0, kind: input, shape index: {}]   ;;  %s1555_s1 = inlined_call_operand.vmem [shape: f32[2,64,64], index: 1, kind: input, shape index: {}]   ;;  %s1556_s2 = inlined_call_operand.vmem [shape: f32[2,64,32], index: 2, kind: output, shape index: {}]  }
   0x1   :  { %v11_v0 = vld [vmem:[%s1554_s0] sm:$0xff]  ;;  %v12_v1 = vld [vmem:[%s1554_s0 + $0x8] sm:$0xff]  ;;  %vm1196_vm1 = vmpackc.low %vm27_vm0, %vm27_vm0 }
   0x2   :  { %v1029_v3 = vpack.c.bf16 %v12_v1, %v11_v0  ;;  %v19_v4 = vld [vmem:[%s1554_s0 + $0x40] sm:$0xff]  ;;  %v20_v5 = vld [vmem:[%s1554_s0 + $0x48] sm:$0xff]  ;;  %v13_v6 = vld [vmem:[%s1554_s0 + $0x10] sm:$0xff]  ;;  %933 = vmatprep.mubr.msk.f32.mxu0 %vm27_vm0, %v11_v0 }
   0x3   :  { %v1053_v7 = vpack.c.bf16 %v20_v5, %v19_v4  ;;  %v14_v8 = vld [vmem:[%s1554_s0 + $0x18] sm:$0xff]  ;;  %v21_v9 = vld [vmem:[%s1554_s0 + $0x50] sm:$0xff]  ;;  %961 = vmatprep.mubr.msk.f32.mxu1 %vm27_vm0, %v19_v4  ;;  %v15_v13 = vld [vmem:[%s1554_s0 + $0x20] sm:$0xff] }
   0x4   :  { %v22_v10 = vld [vmem:[%s1554_s0 + $0x58] sm:$0xff]  ;;  %1031 = vmatprep.subr.msk.bf16.mxu0 %vm1196_vm1, %v1029_v3  ;;  %v1035_v11 = vpack.c.bf16 %v14_v8, %v13_v6  ;;  %v16_v14 = vld [vmem:[%s1554_s0 + $0x28] sm:$0xff]  ;;  %v23_v15 = vld [vmem:[%s1554_s0 + $0x60] sm:$0xff] }
   0x5   :  { %v1059_v12 = vpack.c.bf16 %v22_v10, %v21_v9  ;;  %1034 = vmatpush3.bf16.xpose.msk.msra.mxu0 %vm1196_vm1, %v1029_v3  ;;  %1055 = vmatprep.subr.msk.bf16.mxu1 %vm1196_vm1, %v1053_v7  ;;  %v24_v16 = vld [vmem:[%s1554_s0 + $0x68] sm:$0xff]  ;;  %v1041_v17 = vpack.c.bf16 %v16_v14, %v15_v13  ;;  %v17_v19 = vld [vmem:[%s1554_s0 + $0x30] sm:$0xff]  ;;  %v18_v20 = vld [vmem:[%s1554_s0 + $0x38] sm:$0xff] }
   0x6   :  { %1058 = vmatpush3.bf16.xpose.msk.msra.mxu1 %vm1196_vm1, %v1053_v7  ;;  %1037 = vmatprep.subr.msk.bf16.mxu0 %vm1196_vm1, %v1035_v11  ;;  %v1065_v18 = vpack.c.bf16 %v24_v16, %v23_v15  ;;  %v25_v21 = vld [vmem:[%s1554_s0 + $0x70] sm:$0xff]  ;;  %v26_v22 = vld [vmem:[%s1554_s0 + $0x78] sm:$0xff]  ;;  %v1047_v23 = vpack.c.bf16 %v18_v20, %v17_v19 }
   0x7   :  { %1061 = vmatprep.subr.msk.bf16.mxu1 %vm1196_vm1, %v1059_v12  ;;  %v1071_v24 = vpack.c.bf16 %v26_v22, %v25_v21 }
   0xd   :  { %1040 = vmatpush3.bf16.xpose.msk.msra.mxu0 %vm1196_vm1, %v1035_v11 }
   0xe   :  { %1064 = vmatpush3.bf16.xpose.msk.msra.mxu1 %vm1196_vm1, %v1059_v12  ;;  %1043 = vmatprep.subr.msk.bf16.mxu0 %vm1196_vm1, %v1041_v17 }
   0xf   :  { %1067 = vmatprep.subr.msk.bf16.mxu1 %vm1196_vm1, %v1065_v18 }
  0x15   :  { %1046 = vmatpush3.bf16.xpose.msk.msra.mxu0 %vm1196_vm1, %v1041_v17 }
  0x16   :  { %1070 = vmatpush3.bf16.xpose.msk.msra.mxu1 %vm1196_vm1, %v1065_v18  ;;  %1049 = vmatprep.subr.msk.bf16.mxu0 %vm1196_vm1, %v1047_v23 }
  0x17   :  { %1073 = vmatprep.subr.msk.bf16.mxu1 %vm1196_vm1, %v1071_v24 }
  0x1d   :  { %1052 = vmatpush3.bf16.xpose.msk.msra.mxu0 %vm1196_vm1, %v1047_v23 }
  0x1e   :  { %1076 = vmatpush3.bf16.xpose.msk.msra.mxu1 %vm1196_vm1, %v1071_v24  ;;  %1078 = vmatprep.subr.bf16.mxu0 %v1029_v3 }
  0x1f   :  { %1094 = vmatprep.subr.bf16.mxu1 %v1053_v7 }
  0x24   :  { %934 = vmatmul.mubr.msk.f32.vlgmr.msra.gmra.mrb[0].mxu0 %vm27_vm0, %v12_v1 }
  0x25   :  { %962 = vmatmul.mubr.msk.f32.vlgmr.msra.gmra.mrb[0].mxu1 %vm27_vm0, %v20_v5  ;;  %936 = vmatprep.mubr.msk.f32.mxu0 %vm27_vm0, %v13_v6 }
  0x26   :  { %964 = vmatprep.mubr.msk.f32.mxu1 %vm27_vm0, %v21_v9  ;;  %1080 = vmatpush3.bf16.msra.mxu0 %v1029_v3 }
  0x27   :  { %1082 = vmatprep.subr.bf16.mxu0 %v1035_v11  ;;  %1096 = vmatpush3.bf16.msra.mxu1 %v1053_v7 }
  0x28   :  { %937 = vmatmul.mubr.msk.f32.gmra.mrb[2].mxu0 %vm27_vm0, %v14_v8  ;;  %1098 = vmatprep.subr.bf16.mxu1 %v1059_v12 }
  0x29   :  { %965 = vmatmul.mubr.msk.f32.gmra.mrb[2].mxu1 %vm27_vm0, %v22_v10  ;;  %939 = vmatprep.mubr.msk.f32.mxu0 %vm27_vm0, %v15_v13 }
  0x2a   :  { %967 = vmatprep.mubr.msk.f32.mxu1 %vm27_vm0, %v23_v15  ;;  %1084 = vmatpush3.bf16.msra.mxu0 %v1035_v11 }
  0x2b   :  { %1086 = vmatprep.subr.bf16.mxu0 %v1041_v17  ;;  %1100 = vmatpush3.bf16.msra.mxu1 %v1059_v12 }
  0x2c   :  { %940 = vmatmul.mubr.msk.f32.gmra.mrb[4].mxu0 %vm27_vm0, %v16_v14  ;;  %1102 = vmatprep.subr.bf16.mxu1 %v1065_v18 }
  0x2d   :  { %968 = vmatmul.mubr.msk.f32.gmra.mrb[4].mxu1 %vm27_vm0, %v24_v16  ;;  %942 = vmatprep.mubr.msk.f32.mxu0 %vm27_vm0, %v17_v19 }
  0x2e   :  { %970 = vmatprep.mubr.msk.f32.mxu1 %vm27_vm0, %v25_v21  ;;  %1088 = vmatpush3.bf16.msra.mxu0 %v1041_v17 }
  0x2f   :  { %1090 = vmatprep.subr.bf16.mxu0 %v1047_v23  ;;  %1104 = vmatpush3.bf16.msra.mxu1 %v1065_v18 }
  0x30   :  { %943 = vmatmul.mubr.msk.f32.gmra.mrb[6].mxu0 %vm27_vm0, %v18_v20  ;;  %1106 = vmatprep.subr.bf16.mxu1 %v1071_v24 }
  0x31   :  { %971 = vmatmul.mubr.msk.f32.gmra.mrb[6].mxu1 %vm27_vm0, %v26_v22 }
  0x32   :  { %1092 = vmatpush3.bf16.msra.mxu0 %v1047_v23 }
  0x33   :  { %1108 = vmatpush3.bf16.msra.mxu1 %v1071_v24 }
  0xf7   :  { %v935_v25 = vpop.f32.mrb[0].mxu0 }
  0xf8   :  { %v118_v26 = vpop.f32.mrb[1].mxu0  ;;  %v290_v27 = vsel %vm286_vm2, %v935_v25, -inf  ;;  %v963_v28 = vpop.f32.mrb[0].mxu1 }
  0xf9   :  { %291 = vmax.xlane.f32.xlu1 %v290_v27  ;;  %v287_v29 = vsel %vm286_vm2, %v118_v26, -inf  ;;  %v247_v30 = vpop.f32.mrb[1].mxu1  ;;  %v314_v31 = vsel %vm286_vm2, %v963_v28, -inf }
  0xfa   :  { %288 = vmax.xlane.f32.xlu0 %v287_v29  ;;  %v311_v32 = vsel %vm286_vm2, %v247_v30, -inf }
  0xfb   :  { %v938_v33 = vpop.f32.mrb[2].mxu0 }
  0xfc   :  { %v966_v34 = vpop.f32.mrb[2].mxu1  ;;  %v1294_v35 = vpop.f32.mrb[3].mxu0  ;;  %v296_v38 = vsel %vm286_vm2, %v938_v33, -inf }
  0xfd   :  { %315 = vmax.xlane.f32.xlu1 %v314_v31  ;;  %v1296_v36 = vpop.f32.mrb[3].mxu1  ;;  %v320_v37 = vsel %vm286_vm2, %v966_v34, -inf  ;;  %v293_v44 = vsel %vm286_vm2, %v1294_v35, -inf }
  0xfe   :  { %312 = vmax.xlane.f32.xlu0 %v311_v32  ;;  %v317_v43 = vsel %vm286_vm2, %v1296_v36, -inf }
  0xff   :  { %v1300_v39 = vpop.f32.mrb[4].mxu0 }
 0x100   :  { %v1302_v40 = vpop.f32.mrb[4].mxu1  ;;  %v1304_v41 = vpop.f32.mrb[5].mxu0  ;;  %v302_v50 = vsel %vm286_vm2, %v1300_v39, -inf }
 0x101   :  { %321 = vmax.xlane.f32.xlu1 %v320_v37  ;;  %v1306_v42 = vpop.f32.mrb[5].mxu1  ;;  %v326_v49 = vsel %vm286_vm2, %v1302_v40, -inf  ;;  %v299_v52 = vsel %vm286_vm2, %v1304_v41, -inf }
 0x102   :  { %297 = vmax.xlane.f32.xlu0 %v296_v38  ;;  %v323_v51 = vsel %vm286_vm2, %v1306_v42, -inf }
 0x103   :  { %v1312_v45 = vpop.f32.mrb[6].mxu0 }
 0x104   :  { %v1314_v46 = vpop.f32.mrb[6].mxu1  ;;  %v1316_v47 = vpop.f32.mrb[7].mxu0  ;;  %v308_v56 = vsel %vm286_vm2, %v1312_v45, -inf }
 0x105   :  { %318 = vmax.xlane.f32.xlu1 %v317_v43  ;;  %v1318_v48 = vpop.f32.mrb[7].mxu1  ;;  %v305_v54 = vsel %vm286_vm2, %v1316_v47, -inf  ;;  %v332_v55 = vsel %vm286_vm2, %v1314_v46, -inf }
 0x106   :  { %294 = vmax.xlane.f32.xlu0 %v293_v44  ;;  %v329_v53 = vsel %vm286_vm2, %v1318_v48, -inf }
 0x109   :  { %327 = vmax.xlane.f32.xlu1 %v326_v49 }
 0x10a   :  { %303 = vmax.xlane.f32.xlu0 %v302_v50 }
 0x10d   :  { %324 = vmax.xlane.f32.xlu1 %v323_v51 }
 0x10e   :  { %300 = vmax.xlane.f32.xlu0 %v299_v52 }
 0x111   :  { %330 = vmax.xlane.f32.xlu1 %v329_v53 }
 0x112   :  { %306 = vmax.xlane.f32.xlu0 %v305_v54 }
 0x115   :  { %333 = vmax.xlane.f32.xlu1 %v332_v55 }
 0x116   :  { %309 = vmax.xlane.f32.xlu0 %v308_v56 }
 0x186   :  { %v292_v57 = vpop.xlane.xlu1 %291 }
 0x187   :  { %v336_v58 = vsub.f32 %v935_v25, %v292_v57  ;;  %v289_v59 = vpop.xlane.xlu0 %288 }
 0x188   :  { %v335_v60 = vsub.f32 %v118_v26, %v289_v59 }
 0x189   :  { %v353_v61 = vmul.f32 1.442695, %v336_v58 }
 0x18a   :  { %v351_v62 = vmul.f32 1.442695, %v335_v60  ;;  %v316_v63 = vpop.xlane.xlu1 %315 }
 0x18b   :  { %1109 = vpow2.f32 %v353_v61  ;;  %v344_v0 = vsub.f32 %v963_v28, %v316_v63  ;;  %v313_v1 = vpop.xlane.xlu0 %312 }
 0x18c   :  { %v343_v2 = vsub.f32 %v247_v30, %v313_v1  ;;  %1111 = vpow2.f32 %v351_v62 }
 0x18d   :  { %v369_v3 = vmul.f32 1.442695, %v344_v0 }
 0x18e   :  { %v367_v4 = vmul.f32 1.442695, %v343_v2  ;;  %v322_v5 = vpop.xlane.xlu1 %321 }
 0x18f   :  { %1113 = vpow2.f32 %v369_v3  ;;  %v346_v6 = vsub.f32 %v966_v34, %v322_v5  ;;  %v298_v7 = vpop.xlane.xlu0 %297 }
 0x190   :  { %v338_v8 = vsub.f32 %v938_v33, %v298_v7  ;;  %1115 = vpow2.f32 %v367_v4 }
 0x191   :  { %v373_v9 = vmul.f32 1.442695, %v346_v6 }
 0x192   :  { %v357_v10 = vmul.f32 1.442695, %v338_v8  ;;  %v319_v11 = vpop.xlane.xlu1 %318 }
 0x193   :  { %v345_v12 = vsub.f32 %v1296_v36, %v319_v11  ;;  %v295_v13 = vpop.xlane.xlu0 %294 }
 0x194   :  { %1117 = vpow2.f32 %v357_v10  ;;  %v337_v14 = vsub.f32 %v1294_v35, %v295_v13 }
 0x195   :  { %v1338_v15 = vpop.eup %1109  ;;  %1119 = vpow2.f32 %v373_v9  ;;  %v371_v16 = vmul.f32 1.442695, %v345_v12 }
 0x196   :  { %v355_v17 = vmul.f32 1.442695, %v337_v14  ;;  %v328_v18 = vpop.xlane.xlu1 %327  ;;  %v386_v19 = vsel %vm286_vm2, %v1338_v15, 0.0  ;;  %v1342_v20 = vpop.eup %1111 }
 0x197   :  { %v348_v21 = vsub.f32 %v1302_v40, %v328_v18  ;;  %v304_v22 = vpop.xlane.xlu0 %303  ;;  %387 = vadd.xlane.f32.xlu0 %v386_v19  ;;  %v383_v29 = vsel %vm286_vm2, %v1342_v20, 0.0  ;;  %v463_v18 = vld [vmem:[%s1555_s1] sm:$0xff]  ;;  %v464_v19 = vld [vmem:[%s1555_s1 + $0x8] sm:$0xff] }
 0x198   :  { %1121 = vpow2.f32 %v355_v17  ;;  %v340_v23 = vsub.f32 %v1300_v39, %v304_v22  ;;  %vm479_vm3 = vcmp.ge.f32.partialorder %v463_v18, 0.0  ;;  %vm480_vm4 = vcmp.ge.f32.partialorder %v464_v19, 0.0 }
 0x199   :  { %v1346_v24 = vpop.eup %1113  ;;  %1123 = vpow2.f32 %v371_v16  ;;  %v377_v25 = vmul.f32 1.442695, %v348_v21 }
 0x19a   :  { %v361_v26 = vmul.f32 1.442695, %v340_v23  ;;  %v325_v27 = vpop.xlane.xlu1 %324  ;;  %v410_v28 = vsel %vm286_vm2, %v1346_v24, 0.0  ;;  %v1352_v30 = vpop.eup %1115 }
 0x19b   :  { %v347_v31 = vsub.f32 %v1306_v42, %v325_v27  ;;  %411 = vadd.xlane.f32.xlu1 %v410_v28  ;;  %v301_v32 = vpop.xlane.xlu0 %300  ;;  %384 = vadd.xlane.f32.xlu0 %v383_v29  ;;  %v407_v38 = vsel %vm286_vm2, %v1352_v30, 0.0  ;;  %v472_v29 = vld [vmem:[%s1555_s1 + $0x48] sm:$0xff] }
 0x19c   :  { %1125 = vpow2.f32 %v361_v26  ;;  %v339_v33 = vsub.f32 %v1304_v41, %v301_v32  ;;  %v471_v26 = vld [vmem:[%s1555_s1 + $0x40] sm:$0xff]  ;;  %vm488_vm6 = vcmp.ge.f32.partialorder %v472_v29, 0.0 }
 0x19d   :  { %1127 = vpow2.f32 %v377_v25  ;;  %v375_v34 = vmul.f32 1.442695, %v347_v31  ;;  %vm487_vm5 = vcmp.ge.f32.partialorder %v471_v26, 0.0 }
 0x19e   :  { %v1356_v35 = vpop.eup %1117  ;;  %v359_v36 = vmul.f32 1.442695, %v339_v33  ;;  %v331_v37 = vpop.xlane.xlu1 %330 }
 0x19f   :  { %v1360_v39 = vpop.eup %1119  ;;  %v349_v40 = vsub.f32 %v1318_v48, %v331_v37  ;;  %408 = vadd.xlane.f32.xlu1 %v407_v38  ;;  %v307_v42 = vpop.xlane.xlu0 %306  ;;  %v392_v43 = vsel %vm286_vm2, %v1356_v35, 0.0  ;;  %v465_v38 = vld [vmem:[%s1555_s1 + $0x10] sm:$0xff] }
 0x1a0   :  { %1129 = vpow2.f32 %v359_v36  ;;  %v341_v41 = vsub.f32 %v1316_v47, %v307_v42  ;;  %393 = vadd.xlane.f32.xlu0 %v392_v43  ;;  %v416_v52 = vsel %vm286_vm2, %v1360_v39, 0.0  ;;  %vm481_vm7 = vcmp.ge.f32.partialorder %v465_v38, 0.0 }
 0x1a1   :  { %1131 = vpow2.f32 %v375_v34  ;;  %v379_v44 = vmul.f32 1.442695, %v349_v40 }
 0x1a2   :  { %v1366_v49 = vpop.eup %1121  ;;  %v363_v50 = vmul.f32 1.442695, %v341_v41  ;;  %v334_v51 = vpop.xlane.xlu1 %333 }
 0x1a3   :  { %v1370_v53 = vpop.eup %1123  ;;  %v350_v48 = vsub.f32 %v1314_v46, %v334_v51  ;;  %417 = vadd.xlane.f32.xlu1 %v416_v52  ;;  %v310_v54 = vpop.xlane.xlu0 %309  ;;  %v389_v55 = vsel %vm286_vm2, %v1366_v49, 0.0 }
 0x1a4   :  { %1133 = vpow2.f32 %v363_v50  ;;  %v342_v47 = vsub.f32 %v1312_v45, %v310_v54  ;;  %390 = vadd.xlane.f32.xlu0 %v389_v55  ;;  %v413_v59 = vsel %vm286_vm2, %v1370_v53, 0.0  ;;  %v473_v50 = vld [vmem:[%s1555_s1 + $0x50] sm:$0xff] }
 0x1a5   :  { %1135 = vpow2.f32 %v379_v44  ;;  %v381_v56 = vmul.f32 1.442695, %v350_v48  ;;  %v474_v48 = vld [vmem:[%s1555_s1 + $0x58] sm:$0xff]  ;;  %vm489_vm9 = vcmp.ge.f32.partialorder %v473_v50, 0.0 }
 0x1a6   :  { %v1376_v57 = vpop.eup %1125  ;;  %v365_v58 = vmul.f32 1.442695, %v342_v47  ;;  %vm490_vm10 = vcmp.ge.f32.partialorder %v474_v48, 0.0 }
 0x1a7   :  { %v1380_v60 = vpop.eup %1127  ;;  %414 = vadd.xlane.f32.xlu1 %v413_v59  ;;  %v398_v46 = vsel %vm286_vm2, %v1376_v57, 0.0 }
 0x1a8   :  { %1137 = vpow2.f32 %v365_v58  ;;  %399 = vadd.xlane.f32.xlu0 %v398_v46  ;;  %v422_v45 = vsel %vm286_vm2, %v1380_v60, 0.0  ;;  %v467_v46 = vld [vmem:[%s1555_s1 + $0x20] sm:$0xff] }
 0x1a9   :  { %1139 = vpow2.f32 %v381_v56  ;;  %vm483_vm11 = vcmp.ge.f32.partialorder %v467_v46, 0.0 }
 0x1aa   :  { %v1384_v61 = vpop.eup %1129 }
 0x1ab   :  { %v1388_v62 = vpop.eup %1131  ;;  %423 = vadd.xlane.f32.xlu1 %v422_v45  ;;  %v395_v63 = vsel %vm286_vm2, %v1384_v61, 0.0 }
 0x1ac   :  { %396 = vadd.xlane.f32.xlu0 %v395_v63  ;;  %v419_v1 = vsel %vm286_vm2, %v1388_v62, 0.0 }
 0x1ae   :  { %v1392_v0 = vpop.eup %1133 }
 0x1af   :  { %v1396_v2 = vpop.eup %1135  ;;  %420 = vadd.xlane.f32.xlu1 %v419_v1  ;;  %v401_v3 = vsel %vm286_vm2, %v1392_v0, 0.0 }
 0x1b0   :  { %402 = vadd.xlane.f32.xlu0 %v401_v3  ;;  %v425_v5 = vsel %vm286_vm2, %v1396_v2, 0.0 }
 0x1b2   :  { %v1400_v4 = vpop.eup %1137 }
 0x1b3   :  { %v1404_v6 = vpop.eup %1139  ;;  %426 = vadd.xlane.f32.xlu1 %v425_v5  ;;  %v404_v7 = vsel %vm286_vm2, %v1400_v4, 0.0 }
 0x1b4   :  { %405 = vadd.xlane.f32.xlu0 %v404_v7  ;;  %v428_v8 = vsel %vm286_vm2, %v1404_v6, 0.0  ;;  %v475_v7 = vld [vmem:[%s1555_s1 + $0x60] sm:$0xff] }
 0x1b5   :  { %vm491_vm13 = vcmp.ge.f32.partialorder %v475_v7, 0.0 }
 0x1b7   :  { %429 = vadd.xlane.f32.xlu1 %v428_v8 }
 0x224   :  { %v388_v9 = vpop.xlane.xlu0 %387 }
 0x225   :  { %1141 = vrcp.f32 %v388_v9  ;;  %v469_v9 = vld [vmem:[%s1555_s1 + $0x30] sm:$0xff] }
 0x226   :  { %vm485_vm14 = vcmp.ge.f32.partialorder %v469_v9, 0.0 }
 0x228   :  { %v412_v10 = vpop.xlane.xlu1 %411  ;;  %v385_v11 = vpop.xlane.xlu0 %384 }
 0x229   :  { %1143 = vrcp.f32 %v412_v10  ;;  %v476_v10 = vld [vmem:[%s1555_s1 + $0x68] sm:$0xff] }
 0x22a   :  { %1145 = vrcp.f32 %v385_v11  ;;  %vm492_vm15 = vcmp.ge.f32.partialorder %v476_v10, 0.0 }
 0x22c   :  { %v409_v12 = vpop.xlane.xlu1 %408 }
 0x22d   :  { %1147 = vrcp.f32 %v409_v12  ;;  %v394_v13 = vpop.xlane.xlu0 %393 }
 0x22e   :  { %1149 = vrcp.f32 %v394_v13 }
 0x22f   :  { %v1142_v16 = vpop.eup %1141 }
 0x230   :  { %v418_v14 = vpop.xlane.xlu1 %417  ;;  %v496_v25 = vmul.f32 %v1142_v16, %v1338_v15  ;;  %v477_v16 = vld [vmem:[%s1555_s1 + $0x70] sm:$0xff] }
 0x231   :  { %1151 = vrcp.f32 %v418_v14  ;;  %v391_v17 = vpop.xlane.xlu0 %390  ;;  %vm493_vm1 = vcmp.ge.f32.partialorder %v477_v16, 0.0 }
 0x232   :  { %1153 = vrcp.f32 %v391_v17  ;;  %v512_v34 = vsel %vm480_vm4, %v496_v25, 0.0 }
 0x233   :  { %v1144_v21 = vpop.eup %1143 }
 0x234   :  { %v1146_v22 = vpop.eup %1145  ;;  %v415_v23 = vpop.xlane.xlu1 %414  ;;  %v504_v33 = vmul.f32 %v1144_v21, %v1346_v24  ;;  %v466_v24 = vld [vmem:[%s1555_s1 + $0x18] sm:$0xff] }
 0x235   :  { %1155 = vrcp.f32 %v415_v23  ;;  %v400_v27 = vpop.xlane.xlu0 %399  ;;  %v495_v28 = vmul.f32 %v1146_v22, %v1342_v20  ;;  %vm482_vm8 = vcmp.ge.f32.partialorder %v466_v24, 0.0 }
 0x236   :  { %1157 = vrcp.f32 %v400_v27 }
 0x237   :  { %v1148_v31 = vpop.eup %1147  ;;  %v511_v32 = vsel %vm479_vm3, %v495_v28, 0.0 }
 0x238   :  { %989 = vmatprep.mubr.msk.f32.mxu0 %vm286_vm2, %v511_v32  ;;  %v424_v15 = vpop.xlane.xlu1 %423  ;;  %v503_v36 = vmul.f32 %v1148_v31, %v1352_v30  ;;  %v1150_v37 = vpop.eup %1149  ;;  %v520_v30 = vsel %vm488_vm6, %v504_v33, 0.0 }
 0x239   :  { %1159 = vrcp.f32 %v424_v15  ;;  %990 = vmatmul.mubr.msk.f32.vlgmr.msra.gmra.mrb[8].mxu0 %vm286_vm2, %v512_v34  ;;  %v397_v20 = vpop.xlane.xlu0 %396  ;;  %v498_v44 = vmul.f32 %v1150_v37, %v1356_v35 }
 0x23a   :  { %1161 = vrcp.f32 %v397_v20  ;;  %v519_v40 = vsel %vm487_vm5, %v503_v36, 0.0 }
 0x23b   :  { %v1152_v42 = vpop.eup %1151  ;;  %1017 = vmatprep.mubr.msk.f32.mxu1 %vm286_vm2, %v519_v40  ;;  %v514_v56 = vsel %vm482_vm8, %v498_v44, 0.0 }
 0x23c   :  { %v1154_v43 = vpop.eup %1153  ;;  %1018 = vmatmul.mubr.msk.f32.vlgmr.msra.gmra.mrb[8].mxu1 %vm286_vm2, %v520_v30  ;;  %v421_v41 = vpop.xlane.xlu1 %420  ;;  %v506_v47 = vmul.f32 %v1152_v42, %v1360_v39  ;;  %v468_v39 = vld [vmem:[%s1555_s1 + $0x28] sm:$0xff] }
 0x23d   :  { %1163 = vrcp.f32 %v421_v41  ;;  %v403_v51 = vpop.xlane.xlu0 %402  ;;  %v497_v52 = vmul.f32 %v1154_v43, %v1366_v49  ;;  %vm484_vm12 = vcmp.ge.f32.partialorder %v468_v39, 0.0 }
 0x23e   :  { %1165 = vrcp.f32 %v403_v51 }
 0x23f   :  { %v1156_v54 = vpop.eup %1155  ;;  %v513_v55 = vsel %vm481_vm7, %v497_v52, 0.0 }
 0x240   :  { %v427_v35 = vpop.xlane.xlu1 %426  ;;  %992 = vmatprep.mubr.msk.f32.mxu0 %vm286_vm2, %v513_v55  ;;  %v505_v58 = vmul.f32 %v1156_v54, %v1370_v53  ;;  %v1158_v59 = vpop.eup %1157  ;;  %v522_v53 = vsel %vm490_vm10, %v506_v47, 0.0 }
 0x241   :  { %1167 = vrcp.f32 %v427_v35  ;;  %993 = vmatmul.mubr.msk.f32.gmra.mrb[10].mxu0 %vm286_vm2, %v514_v56  ;;  %v406_v49 = vpop.xlane.xlu0 %405  ;;  %v500_v5 = vmul.f32 %v1158_v59, %v1376_v57 }
 0x242   :  { %1169 = vrcp.f32 %v406_v49  ;;  %v521_v45 = vsel %vm489_vm9, %v505_v58, 0.0 }
 0x243   :  { %v1160_v63 = vpop.eup %1159  ;;  %1020 = vmatprep.mubr.msk.f32.mxu1 %vm286_vm2, %v521_v45  ;;  %v516_v14 = vsel %vm484_vm12, %v500_v5, 0.0 }
 0x244   :  { %v1162_v1 = vpop.eup %1161  ;;  %1021 = vmatmul.mubr.msk.f32.gmra.mrb[10].mxu1 %vm286_vm2, %v522_v53  ;;  %v430_v3 = vpop.xlane.xlu1 %429  ;;  %v508_v57 = vmul.f32 %v1160_v63, %v1380_v60  ;;  %v470_v60 = vld [vmem:[%s1555_s1 + $0x38] sm:$0xff] }
 0x245   :  { %1171 = vrcp.f32 %v430_v3  ;;  %v499_v8 = vmul.f32 %v1162_v1, %v1384_v61  ;;  %vm486_vm3 = vcmp.ge.f32.partialorder %v470_v60, 0.0 }
 0x247   :  { %v1164_v11 = vpop.eup %1163  ;;  %v515_v12 = vsel %vm483_vm11, %v499_v8, 0.0 }
 0x248   :  { %v1166_v13 = vpop.eup %1165  ;;  %995 = vmatprep.mubr.msk.f32.mxu0 %vm286_vm2, %v515_v12  ;;  %v507_v61 = vmul.f32 %v1164_v11, %v1388_v62  ;;  %v524_v62 = vsel %vm492_vm15, %v508_v57, 0.0 }
 0x249   :  { %996 = vmatmul.mubr.msk.f32.gmra.mrb[12].mxu0 %vm286_vm2, %v516_v14  ;;  %v501_v17 = vmul.f32 %v1166_v13, %v1392_v0  ;;  %v478_v0 = vld [vmem:[%s1555_s1 + $0x78] sm:$0xff] }
 0x24a   :  { %v523_v18 = vsel %vm491_vm13, %v507_v61, 0.0  ;;  %vm494_vm4 = vcmp.ge.f32.partialorder %v478_v0, 0.0 }
 0x24b   :  { %v1168_v19 = vpop.eup %1167  ;;  %1023 = vmatprep.mubr.msk.f32.mxu1 %vm286_vm2, %v523_v18  ;;  %v517_v21 = vsel %vm485_vm14, %v501_v17, 0.0 }
 0x24c   :  { %v1170_v22 = vpop.eup %1169  ;;  %998 = vmatprep.mubr.msk.f32.mxu0 %vm286_vm2, %v517_v21  ;;  %1024 = vmatmul.mubr.msk.f32.gmra.mrb[12].mxu1 %vm286_vm2, %v524_v62  ;;  %v509_v23 = vmul.f32 %v1168_v19, %v1396_v2 }
 0x24d   :  { %v502_v25 = vmul.f32 %v1170_v22, %v1400_v4 }
 0x24e   :  { %v525_v26 = vsel %vm493_vm1, %v509_v23, 0.0 }
 0x24f   :  { %v1172_v27 = vpop.eup %1171  ;;  %1026 = vmatprep.mubr.msk.f32.mxu1 %vm286_vm2, %v525_v26  ;;  %v518_v28 = vsel %vm486_vm3, %v502_v25, 0.0 }
 0x250   :  { %999 = vmatmul.mubr.msk.f32.gmra.mrb[14].mxu0 %vm286_vm2, %v518_v28  ;;  %v510_v29 = vmul.f32 %v1172_v27, %v1404_v6 }
 0x252   :  { %v526_v31 = vsel %vm494_vm4, %v510_v29, 0.0 }
 0x253   :  { %1027 = vmatmul.mubr.msk.f32.gmra.mrb[14].mxu1 %vm286_vm2, %v526_v31 }
 0x30c   :  { %v991_v2 = vpop.f32.mrb[8].mxu0 }
 0x30d   :  { %786 = vst.msk [vmem:[%s1556_s2 + $0x8] sm:$0xff] %vm27_vm0, %v991_v2  ;;  %v617_v4 = vpop.f32.mrb[9].mxu0 }
 0x30e   :  { %785 = vst.msk [vmem:[%s1556_s2] sm:$0xff] %vm27_vm0, %v617_v4 }
 0x30f   :  { %v1019_v32 = vpop.f32.mrb[8].mxu1 }
 0x310   :  { %794 = vst.msk [vmem:[%s1556_s2 + $0x48] sm:$0xff] %vm27_vm0, %v1019_v32  ;;  %v746_v6 = vpop.f32.mrb[9].mxu1 }
 0x311   :  { %793 = vst.msk [vmem:[%s1556_s2 + $0x40] sm:$0xff] %vm27_vm0, %v746_v6 }
 0x314   :  { %v994_v33 = vpop.f32.mrb[10].mxu0 }
 0x315   :  { %788 = vst.msk [vmem:[%s1556_s2 + $0x18] sm:$0xff] %vm27_vm0, %v994_v33  ;;  %v627_v15 = vpop.f32.mrb[11].mxu0 }
 0x316   :  { %787 = vst.msk [vmem:[%s1556_s2 + $0x10] sm:$0xff] %vm27_vm0, %v627_v15 }
 0x317   :  { %v1022_v34 = vpop.f32.mrb[10].mxu1 }
 0x318   :  { %796 = vst.msk [vmem:[%s1556_s2 + $0x58] sm:$0xff] %vm27_vm0, %v1022_v34  ;;  %v756_v36 = vpop.f32.mrb[11].mxu1 }
 0x319   :  { %795 = vst.msk [vmem:[%s1556_s2 + $0x50] sm:$0xff] %vm27_vm0, %v756_v36 }
 0x31c   :  { %v997_v37 = vpop.f32.mrb[12].mxu0 }
 0x31d   :  { %790 = vst.msk [vmem:[%s1556_s2 + $0x28] sm:$0xff] %vm27_vm0, %v997_v37  ;;  %v637_v20 = vpop.f32.mrb[13].mxu0 }
 0x31e   :  { %789 = vst.msk [vmem:[%s1556_s2 + $0x20] sm:$0xff] %vm27_vm0, %v637_v20 }
 0x31f   :  { %v1025_v38 = vpop.f32.mrb[12].mxu1 }
 0x320   :  { %798 = vst.msk [vmem:[%s1556_s2 + $0x68] sm:$0xff] %vm27_vm0, %v1025_v38  ;;  %v766_v40 = vpop.f32.mrb[13].mxu1 }
 0x321   :  { %797 = vst.msk [vmem:[%s1556_s2 + $0x60] sm:$0xff] %vm27_vm0, %v766_v40 }
 0x323   :  { %v1000_v24 = vpop.f32.mrb[14].mxu0 }
 0x324   :  { %792 = vst.msk [vmem:[%s1556_s2 + $0x38] sm:$0xff] %vm27_vm0, %v1000_v24  ;;  %v647_v42 = vpop.f32.mrb[15].mxu0 }
 0x325   :  { %791 = vst.msk [vmem:[%s1556_s2 + $0x30] sm:$0xff] %vm27_vm0, %v647_v42 }
 0x326   :  { %v1028_v30 = vpop.f32.mrb[14].mxu1 }
 0x327   :  { %800 = vst.msk [vmem:[%s1556_s2 + $0x78] sm:$0xff] %vm27_vm0, %v1028_v30  ;;  %v776_v43 = vpop.f32.mrb[15].mxu1 }
 0x328   :  { %799 = vst.msk [vmem:[%s1556_s2 + $0x70] sm:$0xff] %vm27_vm0, %v776_v43 }

</bundles_post_ra>
